<compile_context>
chip_gen: v6e
topology: v6e:2x2x1
jax: 0.10.0
libtpu: 0.0.40
codegen_flags: <defaults>
</compile_context>

<pallas_src>
import functools

import jax
import jax.numpy as jnp
from jax.experimental import pallas as pl
from jax.experimental.pallas import tpu as pltpu

BN_EPS = 1e-5


def _vnet_kernel(n_ref,                       # scalar prefetch: (1,) int32, valid batch columns
                 x_ref,                       # (obs_dim, TB)   batch on lanes
                 wp_ref,                      # (16, Kmax)      rows 0:8 = W1, rows 8:16 = W2
                 vp_ref,                      # (8, 8)          cols: b1,g1,be1,b2,g2,be2,w3,b3
                 o_ref,                       # (1, TB)
                 h_ref,                       # (8, B_pad) VMEM activation slab (or dummy)
                 s1_ref, q1_ref, s2_ref, q2_ref,   # (8,1) f32 VMEM stats scratch
                 *, cache_h):
    p = pl.program_id(0)                      # phase: 0 = layer-1 stats, 1 = layer-2 stats, 2 = emit
    t = pl.program_id(1)                      # batch tile
    obs_dim = x_ref.shape[0]
    tb = x_ref.shape[1]

    @pl.when((p == 0) & (t == 0))
    def _init():
        z = jnp.zeros_like(s1_ref)
        s1_ref[...] = z
        q1_ref[...] = z
        s2_ref[...] = z
        q2_ref[...] = z

    n = n_ref[0]
    n_f = n.astype(jnp.float32)
    # lane mask for padded batch columns (only the padded tail of the last tile is invalid)
    col = t * tb + jax.lax.broadcasted_iota(jnp.int32, (1, tb), 1)
    valid = col < n                                                    # (1, tb)

    # unpack parameters (features down sublanes; vectors are columns -> (8,1) lane-broadcasts)
    wp = wp_ref[...]
    vp = vp_ref[...]
    w1 = wp[0:8, 0:obs_dim]                                            # (8, obs_dim)
    w2 = wp[8:16, 0:8]                                                 # (8, 8)
    b1, g1, be1 = vp[:, 0:1], vp[:, 1:2], vp[:, 2:3]
    b2, g2, be2 = vp[:, 3:4], vp[:, 4:5], vp[:, 5:6]
    w3 = vp[:, 6:7]                                                    # (8, 1) head row
    b3 = vp[0:1, 7:8]                                                  # (1, 1)

    def dense1():
        # transposed layout: (8, obs_dim) @ (obs_dim, tb) -> (8, tb)
        return jnp.dot(w1, x_ref[...], preferred_element_type=jnp.float32) + b1

    def dense2(h1n):
        return jnp.dot(w2, h1n, preferred_element_type=jnp.float32) + b2

    def accumulate(h, s_ref, q_ref):
        hm = jnp.where(valid, h, 0.0)
        s_ref[...] += jnp.sum(hm, axis=1, keepdims=True)
        q_ref[...] += jnp.sum(hm * hm, axis=1, keepdims=True)

    def bn_relu(h, s_ref, q_ref, g, be):
        mu = s_ref[...] / n_f
        var = q_ref[...] / n_f - mu * mu                               # single-pass biased variance
        return jnp.maximum((h - mu) * jax.lax.rsqrt(var + BN_EPS) * g + be, 0.0)

    if cache_h:
        # --- activations cached in VMEM: x is read (and dense1 run) exactly once per tile ---
        slab = pl.ds(pl.multiple_of(t * tb, 128), tb)

        @pl.when(p == 0)
        def _phase0():                                                 # layer-1 batch statistics
            h1 = dense1()
            accumulate(h1, s1_ref, q1_ref)
            h_ref[:, slab] = h1

        @pl.when(p == 1)
        def _phase1():                                                 # layer-2 batch statistics
            h1n = bn_relu(h_ref[:, slab], s1_ref, q1_ref, g1, be1)
            h2 = dense2(h1n)
            accumulate(h2, s2_ref, q2_ref)
            h_ref[:, slab] = h2                                        # overwrite in place

        @pl.when(p == 2)
        def _phase2():                                                 # normalize + head, emit
            h2n = bn_relu(h_ref[:, slab], s2_ref, q2_ref, g2, be2)
            # head: M=1, K=8 -> VPU broadcast-multiply + sublane reduce (skip a 1-row MXU pass)
            o_ref[...] = jnp.sum(w3 * h2n, axis=0, keepdims=True) + b3
    else:
        # --- fallback for very large batches: recompute from x each phase ---
        @pl.when(p == 0)
        def _phase0():
            accumulate(dense1(), s1_ref, q1_ref)

        @pl.when(p == 1)
        def _phase1():
            h1n = bn_relu(dense1(), s1_ref, q1_ref, g1, be1)
            accumulate(dense2(h1n), s2_ref, q2_ref)

        @pl.when(p == 2)
        def _phase2():
            h1n = bn_relu(dense1(), s1_ref, q1_ref, g1, be1)
            h2n = bn_relu(dense2(h1n), s2_ref, q2_ref, g2, be2)
            o_ref[...] = jnp.sum(w3 * h2n, axis=0, keepdims=True) + b3


def vnet_forward(states, params, *, tile_b=8192, h_cache_budget_bytes=16 << 20):
    """states: (B, obs_dim) f32; params in PyTorch layout. Returns (B, 1) f32."""
    (w1, b1, g1, be1, w2, b2, g2, be2, w3, b3) = params
    B, obs_dim = states.shape
    kmax = max(obs_dim, 8)

    # ---- pack parameters: 2 resident DMAs instead of 11 tiny ones ----
    w_pack = jnp.zeros((16, kmax), jnp.float32)
    w_pack = w_pack.at[0:8, 0:obs_dim].set(w1.astype(jnp.float32))
    w_pack = w_pack.at[8:16, 0:8].set(w2.astype(jnp.float32))
    b3_col = jnp.zeros((8,), jnp.float32).at[0].set(b3[0])
    vec_pack = jnp.stack(
        [b1, g1, be1, b2, g2, be2, w3[0], b3_col], axis=1).astype(jnp.float32)   # (8, 8)

    # ---- batch on the lane axis, padded to a lane-aligned tile ----
    tb = min(tile_b, ((B + 127) // 128) * 128)
    b_pad = ((B + tb - 1) // tb) * tb
    num_tiles = b_pad // tb
    x_t = jnp.zeros((obs_dim, b_pad), jnp.float32).at[:, :B].set(
        states.T.astype(jnp.float32))
    n_valid = jnp.array([B], jnp.int32)

    # ---- activation slab: cache pre-norm (8, b_pad) activations in VMEM if they fit ----
    cache_h = 8 * b_pad * 4 <= h_cache_budget_bytes
    slab_cols = b_pad if cache_h else 128                 # dummy slab in the fallback path
    kernel = functools.partial(_vnet_kernel, cache_h=cache_h)

    # x is only needed in phase 0 when caching; out only advances in phase 2 -> 1 writeback/tile
    if cache_h:
        x_map = lambda p, t, n: (0, jnp.where(p == 0, t, 0))
    else:
        x_map = lambda p, t, n: (0, t)
    out_map = lambda p, t, n: (0, jnp.where(p == 2, t, 0))

    vmem_need = (2 * obs_dim * tb * 4                     # x (double-buffered)
                 + 2 * tb * 4                             # out (double-buffered)
                 + 2 * (16 * max(kmax, 128) + 8 * 128) * 4  # packed params (lane-padded)
                 + 8 * slab_cols * 4                      # activation slab
                 + 4 * 8 * 128 * 4)                       # stats scratch (lane-padded)
    vmem_limit = int(min(vmem_need + (8 << 20), 48 << 20))

    x_reads = 1 if cache_h else 3
    flops = 2 * B * obs_dim * 8 * x_reads + 2 * B * 8 * 8 * (1 if cache_h else 2) + 2 * B * 8
    bytes_accessed = (x_reads * obs_dim * b_pad * 4 + b_pad * 4
                      + (w_pack.size + vec_pack.size) * 4)

    out_t = pl.pallas_call(
        kernel,
        out_shape=jax.ShapeDtypeStruct((1, b_pad), jnp.float32),
        grid_spec=pltpu.PrefetchScalarGridSpec(
            num_scalar_prefetch=1,
            grid=(3, num_tiles),                                    # (phase, batch tile)
            in_specs=[
                pl.BlockSpec((obs_dim, tb), x_map),
                pl.BlockSpec((16, kmax), lambda p, t, n: (0, 0)),   # weights resident
                pl.BlockSpec((8, 8), lambda p, t, n: (0, 0)),       # vectors resident
            ],
            out_specs=pl.BlockSpec((1, tb), out_map),
            scratch_shapes=[pltpu.VMEM((8, slab_cols), jnp.float32)]
                         + [pltpu.VMEM((8, 1), jnp.float32)] * 4,
        ),
        compiler_params=pltpu.CompilerParams(
            dimension_semantics=("arbitrary", "arbitrary"),         # cross-tile BN reductions
            vmem_limit_bytes=vmem_limit,
        ),
        cost_estimate=pl.CostEstimate(
            flops=flops, transcendentals=6 * B, bytes_accessed=bytes_accessed),
    )(n_valid, x_t, w_pack, vec_pack)

    return out_t[0, :B].reshape(B, 1)


def init_params(key, obs_dim):
    """PyTorch-layout params mirroring init_orthogonal: orthogonal weights (out, in),
    small biases, BatchNorm gamma=1 / beta=0."""
    k1, k2, k3, k4 = jax.random.split(key, 4)
    ortho = jax.nn.initializers.orthogonal()
    w1 = ortho(k1, (8, obs_dim), jnp.float32)
    w2 = ortho(k2, (8, 8), jnp.float32)
    w3 = ortho(k3, (1, 8), jnp.float32)
    kb1, kb2, kb3 = jax.random.split(k4, 3)
    b1 = 0.1 * jax.random.normal(kb1, (8,), jnp.float32)
    b2 = 0.1 * jax.random.normal(kb2, (8,), jnp.float32)
    b3 = 0.1 * jax.random.normal(kb3, (1,), jnp.float32)
    g1 = jnp.ones((8,), jnp.float32)
    be1 = jnp.zeros((8,), jnp.float32)
    g2 = jnp.ones((8,), jnp.float32)
    be2 = jnp.zeros((8,), jnp.float32)
    return (w1, b1, g1, be1, w2, b2, g2, be2, w3, b3)


def vnet_reference(states, params):
    """Pure-JAX reference of the same forward pass (train-mode BatchNorm), standard layout."""
    (w1, b1, g1, be1, w2, b2, g2, be2, w3, b3) = params

    def bn_relu(h, g, be):
        mu = jnp.mean(h, axis=0, keepdims=True)
        var = jnp.mean((h - mu) ** 2, axis=0, keepdims=True)
        return jnp.maximum((h - mu) / jnp.sqrt(var + BN_EPS) * g + be, 0.0)

    h = bn_relu(states @ w1.T + b1, g1, be1)
    h = bn_relu(h @ w2.T + b2, g2, be2)
    return h @ w3.T + b3


if __name__ == "__main__":
    key = jax.random.PRNGKey(0)
    k_param, k_x1, k_x2, k_x3 = jax.random.split(key, 4)

    obs_dim = 4
    act_dim = 2      # unused by VNet.forward (value net), kept for signature parity
    params = init_params(k_param, obs_dim)

    # small batch (pads to one 128-wide lane tile; exercises the lane mask)
    batch = 8
    states = jax.random.normal(k_x1, (batch, obs_dim), jnp.float32)
    out = jax.block_until_ready(vnet_forward(states, params))
    ref = vnet_reference(states, params)
    assert out.shape == (batch, 1)
    assert jnp.allclose(out, ref, atol=3e-5, rtol=1e-4), (out, ref)

    # multi-tile batch: exercises cross-tile BN stat accumulation + cached activation slab
    batch2 = 200
    states2 = jax.random.normal(k_x2, (batch2, obs_dim), jnp.float32)
    out2 = jax.block_until_ready(vnet_forward(states2, params, tile_b=128))
    ref2 = vnet_reference(states2, params)
    assert out2.shape == (batch2, 1)
    assert jnp.allclose(out2, ref2, atol=3e-5, rtol=1e-4), float(jnp.abs(out2 - ref2).max())

    # recompute-from-x fallback path (tiny cache budget forces it)
    batch3 = 300
    states3 = jax.random.normal(k_x3, (batch3, obs_dim), jnp.float32)
    out3 = jax.block_until_ready(
        vnet_forward(states3, params, tile_b=128, h_cache_budget_bytes=0))
    ref3 = vnet_reference(states3, params)
    assert out3.shape == (batch3, 1)
    assert jnp.allclose(out3, ref3, atol=3e-5, rtol=1e-4), float(jnp.abs(out3 - ref3).max())

    print("KERNEL_OK")
</pallas_src>

<mosaic_0001>
module attributes {stable_mosaic.version = 11 : i64} {
  func.func @_vnet_kernel(%arg0: i32, %arg1: i32, %arg2: memref<1xi32, #tpu.memory_space<smem>>, %arg3: memref<4x128xf32, #tpu.memory_space<vmem>>, %arg4: memref<16x8xf32, #tpu.memory_space<vmem>>, %arg5: memref<8x8xf32, #tpu.memory_space<vmem>>, %arg6: memref<1x128xf32, #tpu.memory_space<vmem>>, %arg7: memref<8x128xf32, #tpu.memory_space<vmem>>, %arg8: memref<8x1xf32, #tpu.memory_space<vmem>>, %arg9: memref<8x1xf32, #tpu.memory_space<vmem>>, %arg10: memref<8x1xf32, #tpu.memory_space<vmem>>, %arg11: memref<8x1xf32, #tpu.memory_space<vmem>>) attributes {dimension_semantics = [#tpu.dimension_semantics<arbitrary>, #tpu.dimension_semantics<arbitrary>], iteration_bounds = array<i64: 3, 1>, scalar_prefetch = 1 : i64, scratch_operands = 5 : i64, tpu.core_type = #tpu.core_type<tc>, window_params = [{transform_indices = @transform_0, window_bounds = array<i64: 4, 128>}, {pipeline_mode = #tpu.pipeline_mode<synchronous>, transform_indices = @transform_1, window_bounds = array<i64: 16, 8>}, {pipeline_mode = #tpu.pipeline_mode<synchronous>, transform_indices = @transform_2, window_bounds = array<i64: 8, 8>}, {transform_indices = @transform_3, window_bounds = array<i64: 1, 128>}]} {
    %c0_i32 = arith.constant 0 : i32
    %0 = arith.cmpi eq, %arg0, %c0_i32 : i32
    %c0_i32_0 = arith.constant 0 : i32
    %1 = arith.cmpi eq, %arg1, %c0_i32_0 : i32
    %2 = arith.andi %0, %1 : i1
    %3 = arith.extui %2 : i1 to i32
    %c0_i32_1 = arith.constant 0 : i32
    %4 = arith.cmpi ne, %3, %c0_i32_1 : i32
    scf.if %4 {
      %cst = arith.constant 0.000000e+00 : f32
      %36 = vector.broadcast %cst : f32 to vector<8x1xf32>
      %c0_11 = arith.constant 0 : index
      %c0_12 = arith.constant 0 : index
      %37 = vector.load %arg8[%c0_11, %c0_12] : memref<8x1xf32, #tpu.memory_space<vmem>>, vector<8x1xf32>
      tpu.vector_store %arg8[%c0_11, %c0_12], %36 {strides = array<i32>} : memref<8x1xf32, #tpu.memory_space<vmem>>, vector<8x1xf32>,
      %c0_13 = arith.constant 0 : index
      %c0_14 = arith.constant 0 : index
      %38 = vector.load %arg9[%c0_13, %c0_14] : memref<8x1xf32, #tpu.memory_space<vmem>>, vector<8x1xf32>
      tpu.vector_store %arg9[%c0_13, %c0_14], %36 {strides = array<i32>} : memref<8x1xf32, #tpu.memory_space<vmem>>, vector<8x1xf32>,
      %c0_15 = arith.constant 0 : index
      %c0_16 = arith.constant 0 : index
      %39 = vector.load %arg10[%c0_15, %c0_16] : memref<8x1xf32, #tpu.memory_space<vmem>>, vector<8x1xf32>
      tpu.vector_store %arg10[%c0_15, %c0_16], %36 {strides = array<i32>} : memref<8x1xf32, #tpu.memory_space<vmem>>, vector<8x1xf32>,
      %c0_17 = arith.constant 0 : index
      %c0_18 = arith.constant 0 : index
      %40 = vector.load %arg11[%c0_17, %c0_18] : memref<8x1xf32, #tpu.memory_space<vmem>>, vector<8x1xf32>
      tpu.vector_store %arg11[%c0_17, %c0_18], %36 {strides = array<i32>} : memref<8x1xf32, #tpu.memory_space<vmem>>, vector<8x1xf32>,
    } else {
    }
    %c0 = arith.constant 0 : index
    %5 = memref.load %arg2[%c0] : memref<1xi32, #tpu.memory_space<smem>>
    %6 = arith.sitofp %5 : i32 to f32
    %c128_i32 = arith.constant 128 : i32
    %7 = arith.muli %arg1, %c128_i32 : i32
    %8 = tpu.iota {dimensions = array<i32: 1>} : vector<1x128xi32>
    %9 = vector.broadcast %7 : i32 to vector<1x128xi32>
    %10 = arith.addi %9, %8 : vector<1x128xi32>
    %11 = vector.broadcast %5 : i32 to vector<1x128xi32>
    %12 = arith.cmpi slt, %10, %11 : vector<1x128xi32>
    %c0_2 = arith.constant 0 : index
    %c0_3 = arith.constant 0 : index
    %13 = vector.load %arg4[%c0_2, %c0_3] : memref<16x8xf32, #tpu.memory_space<vmem>>, vector<16x8xf32>
    %c0_4 = arith.constant 0 : index
    %c0_5 = arith.constant 0 : index
    %14 = vector.load %arg5[%c0_4, %c0_5] : memref<8x8xf32, #tpu.memory_space<vmem>>, vector<8x8xf32>
    %15 = vector.extract_strided_slice %13 {offsets = [0, 0], sizes = [8, 4], strides = [1, 1]} : vector<16x8xf32> to vector<8x4xf32>
    %16 = vector.extract_strided_slice %13 {offsets = [8, 0], sizes = [8, 8], strides = [1, 1]} : vector<16x8xf32> to vector<8x8xf32>
    %17 = vector.extract_strided_slice %14 {offsets = [0, 0], sizes = [8, 1], strides = [1, 1]} : vector<8x8xf32> to vector<8x1xf32>
    %18 = vector.extract_strided_slice %14 {offsets = [0, 1], sizes = [8, 1], strides = [1, 1]} : vector<8x8xf32> to vector<8x1xf32>
    %19 = vector.extract_strided_slice %14 {offsets = [0, 2], sizes = [8, 1], strides = [1, 1]} : vector<8x8xf32> to vector<8x1xf32>
    %20 = vector.extract_strided_slice %14 {offsets = [0, 3], sizes = [8, 1], strides = [1, 1]} : vector<8x8xf32> to vector<8x1xf32>
    %21 = vector.extract_strided_slice %14 {offsets = [0, 4], sizes = [8, 1], strides = [1, 1]} : vector<8x8xf32> to vector<8x1xf32>
    %22 = vector.extract_strided_slice %14 {offsets = [0, 5], sizes = [8, 1], strides = [1, 1]} : vector<8x8xf32> to vector<8x1xf32>
    %23 = vector.extract_strided_slice %14 {offsets = [0, 6], sizes = [8, 1], strides = [1, 1]} : vector<8x8xf32> to vector<8x1xf32>
    %24 = vector.extract_strided_slice %14 {offsets = [0, 7], sizes = [1, 1], strides = [1, 1]} : vector<8x8xf32> to vector<1x1xf32>
    %c128_i32_6 = arith.constant 128 : i32
    %25 = arith.muli %arg1, %c128_i32_6 : i32
    %26 = tpu.assume_multiple %25, 128 : i32
    %c0_i32_7 = arith.constant 0 : i32
    %27 = arith.cmpi eq, %arg0, %c0_i32_7 : i32
    %28 = arith.extui %27 : i1 to i32
    %c0_i32_8 = arith.constant 0 : i32
    %29 = arith.cmpi ne, %28, %c0_i32_8 : i32
    scf.if %29 {
      %c0_11 = arith.constant 0 : index
      %c0_12 = arith.constant 0 : index
      %36 = vector.load %arg3[%c0_11, %c0_12] : memref<4x128xf32, #tpu.memory_space<vmem>>, vector<4x128xf32>
      %cst = arith.constant dense<0.000000e+00> : vector<8x128xf32>
      %37 = tpu.matmul %15, %36, %cst {dimension_numbers = #tpu.dot_dimension_numbers<[1], [0], [0], [1], [0, 0, 1, 1], [], []>} : vector<8x4xf32>, vector<4x128xf32>, vector<8x128xf32> -> vector<8x128xf32>
      %38 = vector.broadcast %17 : vector<8x1xf32> to vector<8x128xf32>
      %39 = arith.addf %37, %38 : vector<8x128xf32>
      %cst_13 = arith.constant 0.000000e+00 : f32
      %40 = vector.shape_cast %12 : vector<1x128xi1> to vector<1x128xi1>
      %41 = vector.broadcast %40 : vector<1x128xi1> to vector<8x128xi1>
      %42 = vector.broadcast %cst_13 : f32 to vector<8x128xf32>
      %43 = arith.select %41, %39, %42 : vector<8x128xi1>, vector<8x128xf32>
      %c0_14 = arith.constant 0 : index
      %c0_15 = arith.constant 0 : index
      %44 = vector.load %arg8[%c0_14, %c0_15] : memref<8x1xf32, #tpu.memory_space<vmem>>, vector<8x1xf32>
      %cst_16 = arith.constant dense<0.000000e+00> : vector<8xf32>
      %45 = vector.multi_reduction <add>, %43, %cst_16 [1] : vector<8x128xf32> to vector<8xf32>
      %46 = vector.shape_cast %45 : vector<8xf32> to vector<8x1xf32>
      %47 = arith.addf %44, %46 : vector<8x1xf32>
      %c0_17 = arith.constant 0 : index
      %c0_18 = arith.constant 0 : index
      %48 = vector.load %arg8[%c0_17, %c0_18] : memref<8x1xf32, #tpu.memory_space<vmem>>, vector<8x1xf32>
      tpu.vector_store %arg8[%c0_17, %c0_18], %47 {strides = array<i32>} : memref<8x1xf32, #tpu.memory_space<vmem>>, vector<8x1xf32>,
      %c0_19 = arith.constant 0 : index
      %c0_20 = arith.constant 0 : index
      %49 = vector.load %arg9[%c0_19, %c0_20] : memref<8x1xf32, #tpu.memory_space<vmem>>, vector<8x1xf32>
      %50 = arith.mulf %43, %43 : vector<8x128xf32>
      %cst_21 = arith.constant dense<0.000000e+00> : vector<8xf32>
      %51 = vector.multi_reduction <add>, %50, %cst_21 [1] : vector<8x128xf32> to vector<8xf32>
      %52 = vector.shape_cast %51 : vector<8xf32> to vector<8x1xf32>
      %53 = arith.addf %49, %52 : vector<8x1xf32>
      %c0_22 = arith.constant 0 : index
      %c0_23 = arith.constant 0 : index
      %54 = vector.load %arg9[%c0_22, %c0_23] : memref<8x1xf32, #tpu.memory_space<vmem>>, vector<8x1xf32>
      tpu.vector_store %arg9[%c0_22, %c0_23], %53 {strides = array<i32>} : memref<8x1xf32, #tpu.memory_space<vmem>>, vector<8x1xf32>,
      %c0_24 = arith.constant 0 : index
      %55 = arith.index_cast %26 : i32 to index
      %56 = vector.load %arg7[%c0_24, %55] : memref<8x128xf32, #tpu.memory_space<vmem>>, vector<8x128xf32>
      tpu.vector_store %arg7[%c0_24, %55], %39 {strides = array<i32>} : memref<8x128xf32, #tpu.memory_space<vmem>>, vector<8x128xf32>,
    } else {
    }
    %c1_i32 = arith.constant 1 : i32
    %30 = arith.cmpi eq, %arg0, %c1_i32 : i32
    %31 = arith.extui %30 : i1 to i32
    %c0_i32_9 = arith.constant 0 : i32
    %32 = arith.cmpi ne, %31, %c0_i32_9 : i32
    scf.if %32 {
      %c0_11 = arith.constant 0 : index
      %36 = arith.index_cast %26 : i32 to index
      %37 = vector.load %arg7[%c0_11, %36] : memref<8x128xf32, #tpu.memory_space<vmem>>, vector<8x128xf32>
      %c0_12 = arith.constant 0 : index
      %c0_13 = arith.constant 0 : index
      %38 = vector.load %arg8[%c0_12, %c0_13] : memref<8x1xf32, #tpu.memory_space<vmem>>, vector<8x1xf32>
      %39 = vector.broadcast %6 : f32 to vector<8x1xf32>
      %40 = arith.divf %38, %39 : vector<8x1xf32>
      %c0_14 = arith.constant 0 : index
      %c0_15 = arith.constant 0 : index
      %41 = vector.load %arg9[%c0_14, %c0_15] : memref<8x1xf32, #tpu.memory_space<vmem>>, vector<8x1xf32>
      %42 = vector.broadcast %6 : f32 to vector<8x1xf32>
      %43 = arith.divf %41, %42 : vector<8x1xf32>
      %44 = arith.mulf %40, %40 : vector<8x1xf32>
      %45 = arith.subf %43, %44 : vector<8x1xf32>
      %46 = vector.broadcast %40 : vector<8x1xf32> to vector<8x128xf32>
      %47 = arith.subf %37, %46 : vector<8x128xf32>
      %cst = arith.constant 9.99999974E-6 : f32
      %48 = vector.broadcast %cst : f32 to vector<8x1xf32>
      %49 = arith.addf %45, %48 : vector<8x1xf32>
      %50 = math.rsqrt %49 : vector<8x1xf32>
      %51 = vector.broadcast %50 : vector<8x1xf32> to vector<8x128xf32>
      %52 = arith.mulf %47, %51 : vector<8x128xf32>
      %53 = vector.broadcast %18 : vector<8x1xf32> to vector<8x128xf32>
      %54 = arith.mulf %52, %53 : vector<8x128xf32>
      %55 = vector.broadcast %19 : vector<8x1xf32> to vector<8x128xf32>
      %56 = arith.addf %54, %55 : vector<8x128xf32>
      %cst_16 = arith.constant 0.000000e+00 : f32
      %57 = vector.broadcast %cst_16 : f32 to vector<8x128xf32>
      %58 = arith.maximumf %56, %57 : vector<8x128xf32>
      %cst_17 = arith.constant dense<0.000000e+00> : vector<8x128xf32>
      %59 = tpu.matmul %16, %58, %cst_17 {dimension_numbers = #tpu.dot_dimension_numbers<[1], [0], [0], [1], [0, 0, 1, 1], [], []>} : vector<8x8xf32>, vector<8x128xf32>, vector<8x128xf32> -> vector<8x128xf32>
      %60 = vector.broadcast %20 : vector<8x1xf32> to vector<8x128xf32>
      %61 = arith.addf %59, %60 : vector<8x128xf32>
      %cst_18 = arith.constant 0.000000e+00 : f32
      %62 = vector.shape_cast %12 : vector<1x128xi1> to vector<1x128xi1>
      %63 = vector.broadcast %62 : vector<1x128xi1> to vector<8x128xi1>
      %64 = vector.broadcast %cst_18 : f32 to vector<8x128xf32>
      %65 = arith.select %63, %61, %64 : vector<8x128xi1>, vector<8x128xf32>
      %c0_19 = arith.constant 0 : index
      %c0_20 = arith.constant 0 : index
      %66 = vector.load %arg10[%c0_19, %c0_20] : memref<8x1xf32, #tpu.memory_space<vmem>>, vector<8x1xf32>
      %cst_21 = arith.constant dense<0.000000e+00> : vector<8xf32>
      %67 = vector.multi_reduction <add>, %65, %cst_21 [1] : vector<8x128xf32> to vector<8xf32>
      %68 = vector.shape_cast %67 : vector<8xf32> to vector<8x1xf32>
      %69 = arith.addf %66, %68 : vector<8x1xf32>
      %c0_22 = arith.constant 0 : index
      %c0_23 = arith.constant 0 : index
      %70 = vector.load %arg10[%c0_22, %c0_23] : memref<8x1xf32, #tpu.memory_space<vmem>>, vector<8x1xf32>
      tpu.vector_store %arg10[%c0_22, %c0_23], %69 {strides = array<i32>} : memref<8x1xf32, #tpu.memory_space<vmem>>, vector<8x1xf32>,
      %c0_24 = arith.constant 0 : index
      %c0_25 = arith.constant 0 : index
      %71 = vector.load %arg11[%c0_24, %c0_25] : memref<8x1xf32, #tpu.memory_space<vmem>>, vector<8x1xf32>
      %72 = arith.mulf %65, %65 : vector<8x128xf32>
      %cst_26 = arith.constant dense<0.000000e+00> : vector<8xf32>
      %73 = vector.multi_reduction <add>, %72, %cst_26 [1] : vector<8x128xf32> to vector<8xf32>
      %74 = vector.shape_cast %73 : vector<8xf32> to vector<8x1xf32>
      %75 = arith.addf %71, %74 : vector<8x1xf32>
      %c0_27 = arith.constant 0 : index
      %c0_28 = arith.constant 0 : index
      %76 = vector.load %arg11[%c0_27, %c0_28] : memref<8x1xf32, #tpu.memory_space<vmem>>, vector<8x1xf32>
      tpu.vector_store %arg11[%c0_27, %c0_28], %75 {strides = array<i32>} : memref<8x1xf32, #tpu.memory_space<vmem>>, vector<8x1xf32>,
      %c0_29 = arith.constant 0 : index
      %77 = arith.index_cast %26 : i32 to index
      %78 = vector.load %arg7[%c0_29, %77] : memref<8x128xf32, #tpu.memory_space<vmem>>, vector<8x128xf32>
      tpu.vector_store %arg7[%c0_29, %77], %61 {strides = array<i32>} : memref<8x128xf32, #tpu.memory_space<vmem>>, vector<8x128xf32>,
    } else {
    }
    %c2_i32 = arith.constant 2 : i32
    %33 = arith.cmpi eq, %arg0, %c2_i32 : i32
    %34 = arith.extui %33 : i1 to i32
    %c0_i32_10 = arith.constant 0 : i32
    %35 = arith.cmpi ne, %34, %c0_i32_10 : i32
    scf.if %35 {
      %c0_11 = arith.constant 0 : index
      %36 = arith.index_cast %26 : i32 to index
      %37 = vector.load %arg7[%c0_11, %36] : memref<8x128xf32, #tpu.memory_space<vmem>>, vector<8x128xf32>
      %c0_12 = arith.constant 0 : index
      %c0_13 = arith.constant 0 : index
      %38 = vector.load %arg10[%c0_12, %c0_13] : memref<8x1xf32, #tpu.memory_space<vmem>>, vector<8x1xf32>
      %39 = vector.broadcast %6 : f32 to vector<8x1xf32>
      %40 = arith.divf %38, %39 : vector<8x1xf32>
      %c0_14 = arith.constant 0 : index
      %c0_15 = arith.constant 0 : index
      %41 = vector.load %arg11[%c0_14, %c0_15] : memref<8x1xf32, #tpu.memory_space<vmem>>, vector<8x1xf32>
      %42 = vector.broadcast %6 : f32 to vector<8x1xf32>
      %43 = arith.divf %41, %42 : vector<8x1xf32>
      %44 = arith.mulf %40, %40 : vector<8x1xf32>
      %45 = arith.subf %43, %44 : vector<8x1xf32>
      %46 = vector.broadcast %40 : vector<8x1xf32> to vector<8x128xf32>
      %47 = arith.subf %37, %46 : vector<8x128xf32>
      %cst = arith.constant 9.99999974E-6 : f32
      %48 = vector.broadcast %cst : f32 to vector<8x1xf32>
      %49 = arith.addf %45, %48 : vector<8x1xf32>
      %50 = math.rsqrt %49 : vector<8x1xf32>
      %51 = vector.broadcast %50 : vector<8x1xf32> to vector<8x128xf32>
      %52 = arith.mulf %47, %51 : vector<8x128xf32>
      %53 = vector.broadcast %21 : vector<8x1xf32> to vector<8x128xf32>
      %54 = arith.mulf %52, %53 : vector<8x128xf32>
      %55 = vector.broadcast %22 : vector<8x1xf32> to vector<8x128xf32>
      %56 = arith.addf %54, %55 : vector<8x128xf32>
      %cst_16 = arith.constant 0.000000e+00 : f32
      %57 = vector.broadcast %cst_16 : f32 to vector<8x128xf32>
      %58 = arith.maximumf %56, %57 : vector<8x128xf32>
      %59 = vector.broadcast %23 : vector<8x1xf32> to vector<8x128xf32>
      %60 = arith.mulf %59, %58 : vector<8x128xf32>
      %cst_17 = arith.constant dense<0.000000e+00> : vector<128xf32>
      %61 = vector.multi_reduction <add>, %60, %cst_17 [0] : vector<8x128xf32> to vector<128xf32>
      %62 = vector.shape_cast %61 : vector<128xf32> to vector<1x128xf32>
      %63 = vector.broadcast %24 : vector<1x1xf32> to vector<1x128xf32>
      %64 = arith.addf %62, %63 : vector<1x128xf32>
      %c0_18 = arith.constant 0 : index
      %c0_19 = arith.constant 0 : index
      %65 = vector.load %arg6[%c0_18, %c0_19] : memref<1x128xf32, #tpu.memory_space<vmem>>, vector<1x128xf32>
      tpu.vector_store %arg6[%c0_18, %c0_19], %64 {strides = array<i32>} : memref<1x128xf32, #tpu.memory_space<vmem>>, vector<1x128xf32>,
    } else {
    }
    return
  }
  func.func @transform_0(%arg0: i32, %arg1: i32, %arg2: memref<1xi32, #tpu.memory_space<smem>>) -> (i32, i32) {
    %c0_i32 = arith.constant 0 : i32
    %0 = arith.cmpi eq, %arg0, %c0_i32 : i32
    %c0_i32_0 = arith.constant 0 : i32
    %1 = arith.select %0, %arg1, %c0_i32_0 : i32
    %c0_i32_1 = arith.constant 0 : i32
    %c0_i32_2 = arith.constant 0 : i32
    return %c0_i32_1, %1 : i32, i32
  }
  func.func @transform_1(%arg0: i32, %arg1: i32, %arg2: memref<1xi32, #tpu.memory_space<smem>>) -> (i32, i32) {
    %c0_i32 = arith.constant 0 : i32
    %c0_i32_0 = arith.constant 0 : i32
    %c0_i32_1 = arith.constant 0 : i32
    return %c0_i32, %c0_i32_0 : i32, i32
  }
  func.func @transform_2(%arg0: i32, %arg1: i32, %arg2: memref<1xi32, #tpu.memory_space<smem>>) -> (i32, i32) {
    %c0_i32 = arith.constant 0 : i32
    %c0_i32_0 = arith.constant 0 : i32
    %c0_i32_1 = arith.constant 0 : i32
    return %c0_i32, %c0_i32_0 : i32, i32
  }
  func.func @transform_3(%arg0: i32, %arg1: i32, %arg2: memref<1xi32, #tpu.memory_space<smem>>) -> (i32, i32) {
    %c2_i32 = arith.constant 2 : i32
    %0 = arith.cmpi eq, %arg0, %c2_i32 : i32
    %c0_i32 = arith.constant 0 : i32
    %1 = arith.select %0, %arg1, %c0_i32 : i32
    %c0_i32_0 = arith.constant 0 : i32
    %c0_i32_1 = arith.constant 0 : i32
    return %c0_i32_0, %1 : i32, i32
  }
}

</mosaic_0001>

<bundles_post_ra>
// kernel: tpu_custom_call.1
= control target key start
LH: loop header
LB: loop body
LE: loop exit
PB: predicated region body
PF: predicated region fallthrough
CT: control target
= control target key end

     0   :  { %s894_s0 = inlined_call_operand.<no memory space> [shape: s32[1], index: 0, kind: input, shape index: {}]   ;;  %s895_s1 = inlined_call_operand.vmem [shape: f32[4,128], index: 1, kind: input, shape index: {}]   ;;  %s896_s2 = inlined_call_operand.vmem [shape: f32[16,8], index: 2, kind: input, shape index: {}]   ;;  %s897_s3 = inlined_call_operand.vmem [shape: f32[8,8], index: 3, kind: input, shape index: {}]   ;;  %s898_s4 = inlined_call_operand.hbm [shape: f32[1,128], index: 4, kind: output, shape index: {}]  }
   0x1   :  { %9 = sst [smem:[#allocation8]] %s894_s0 }
   0x2   :  { %10 = vsyncpa [#allocation10], 0 }
   0x3   :  { %12 = vsyncpa [#allocation10 + $0x1], 0  ;;  %s802_s17 = smov 0   ;;  %s804_s18 = smov 0  }
   0x4   :  { %s806_s19 = smov 0  }
   0x5 LB: > { %s604_s0 = sadd.s32 4294967295, %s756_s19   ;;  %s605_s20 = sadd.s32 4294967294, %s756_s19   ;;  %s756_s19 = sphi %s806_s19, %s18_s19   ;;  %s752_s18 = sphi %s804_s18, %s903_s18   ;;  %s748_s17 = sphi %s802_s17, %s902_s17  }
   0x6   : > { %s30_s21 = sadd.s32 1, %s752_s18  ;;  %p609_p0 = scmp.ge.s32.totalorder %s756_s19, 1 }
   0x7   : > { %p32_p1 = scmp.ge.s32.totalorder %s30_s21, 3  ;;  %p165_p2 = scmp.lt.s32.totalorder %s756_s19, 4 }
   0x9   : > { %s905_s21 = smov (%p32_p1, %s30_s21), 0  ;;  %p166_p3 = pnand %p609_p0, %p165_p2 }
   0xa   : > { %p199_p4 = scmp.eq.s32.totalorder (!%p166_p3), %s748_s17, 0 }
   0xb   : > { %169 = sbr.rel (%p166_p3) target bundleno = 1093 (0x445), region = 32 }
  0x10   : > { %204 = sbr.rel (!%p199_p4) target bundleno = 21 (0x15), region = 36  ;;  %vm205_vm0 = vcmask (%p199_p4), 7168   ;;  %v758_v0 = vmov (%p199_p4), 0.0  }
  0x11   : > { %206 = vst.msk [vmem:[#allocation3] sm:$0xff] (%p199_p4), %vm205_vm0, %v758_v0  ;;  %207 = vst.msk [vmem:[#allocation4] sm:$0xff] (%p199_p4), %vm205_vm0, %v758_v0 }
  0x12   : > { %208 = vst.msk [vmem:[#allocation5] sm:$0xff] (%p199_p4), %vm205_vm0, %v758_v0  ;;  %209 = vst.msk [vmem:[#allocation6] sm:$0xff] (%p199_p4), %vm205_vm0, %v758_v0 }
  0x15 PF: > { %s825_s22 = sld [smem:[#allocation8]]  ;;  %v213_v1 = vlaneseq  ;;  %v219_v2 = vld [vmem:[%s896_s2] sm:$0xff]  ;;  %v833_v3 = vld [vmem:[%s896_s2 + $0x8] sm:$0xff]  ;;  %p611_p5 = scmp.ne.s32.totalorder %s748_s17, 0 }
  0x16   : > { %v838_v4 = vld [vmem:[%s897_s3] sm:$0xff] }
  0x17   : > { %v214_v5 = vand.u32 127, %v213_v1 }
  0x18   : > { %224 = sbr.rel (%p611_p5) target bundleno = 371 (0x173), region = 40 }
  0x1b   : > { %s211_s29 = scvt.s32.f32 %s825_s22  ;;  %v217_v6 = vstv %s825_s22 }
  0x1c   : > { %vm842_vm1 = vcmp.lt.s32.totalorder %v214_v5, %v217_v6 }
  0x1d   : > { %v225_v8 = vld [vmem:[%s895_s1] sm:$0xf]  ;;  %vm235_vm2 = vcmask 1043456   ;;  %vm231_vm3 = vcmask 31744   ;;  %v759_v9 = vmov 0.0   ;;  %vm760_vm4 = vmmov 0  }
  0x1e   : > { %626 = vmatprep.subr.mxu0 %v759_v9  ;;  %628 = vmatprep.mubr.msk.f32.mxu0 %vm760_vm4, %v759_v9  ;;  %v761_v10 = vmov 0   ;;  %v312_v17 = vld [vmem:[#allocation3] sm:$0xff]  ;;  %vm316_vm5 = vcmask 7168   ;;  %v318_v19 = vld [vmem:[#allocation4] sm:$0xff] }
  0x1f   : > { %627 = vmatpush3.msk.msra.mxu0 %vm235_vm2, %v225_v8  ;;  %687 = vset.pattern.permute.xlu0 %v761_v10 }
  0x20   : > { %629 = vmatmul.mubr.msk.f32.vlgmr.msra.gmra.mxu0 %vm231_vm3, %v219_v2  ;;  %228 = vperm.xlu0 %687, %v838_v4  }
  0x9b   : > { %v229_v11 = vpop.permute.xlu0 %228 }
  0xe0   : > { %v305_v12 = vpop.f32.mrf.mxu0 }
  0xe1   : > { %v306_v13 = vadd.f32 %v305_v12, %v229_v11 }
  0xe2   : > { %v630_v14 = vpop.f32.mrf.mxu0 }
  0xe3   : > { %327 = vst [vmem:[#allocation2] sm:$0xff] %v306_v13  ;;  %v311_v15 = vsel %vm842_vm1, %v306_v13, 0.0 }
  0xe4   : > { %313 = vadd.xlane.f32.xlu0 %v311_v15  ;;  %v319_v16 = vmul.f32 %v311_v15, %v311_v15 }
  0xe6   : > { %320 = vadd.xlane.f32.xlu1 %v319_v16 }
 0x16d   : > { %v314_v18 = vpop.xlane.xlu0 %313 }
 0x16e   : > { %v315_v20 = vadd.f32 %v314_v18, %v312_v17 }
 0x16f   : > { %v321_v21 = vpop.xlane.xlu1 %320 }
 0x170   : > { %317 = vst.msk [vmem:[#allocation3] sm:$0xff] %vm316_vm5, %v315_v20  ;;  %v322_v22 = vadd.f32 %v321_v21, %v318_v19 }
 0x172   : > { %323 = vst.msk [vmem:[#allocation4] sm:$0xff] %vm316_vm5, %v322_v22 }
 0x173 PF: > { %p614_p6 = scmp.ne.s32.totalorder %s748_s17, 1 }
 0x175   : > { %331 = sbr.rel (%p614_p6) target bundleno = 887 (0x377), region = 44 }
 0x17a   : > { %v337_v23 = vstv %s211_s29  ;;  %v762_v24 = vmov 0   ;;  %v763_v25 = vmov 1   ;;  %v764_v26 = vmov 2   ;;  %v336_v27 = vld [vmem:[#allocation3] sm:$0xff]  ;;  %v340_v28 = vld [vmem:[#allocation4] sm:$0xff]  ;;  %v335_v39 = vld [vmem:[#allocation2] sm:$0xff] }
 0x17b   : > { %688 = vset.pattern.permute.xlu0 %v762_v24  ;;  %692 = vrcp.f32 %v337_v23  ;;  %689 = vset.pattern.permute.xlu1 %v763_v25  ;;  %v765_v36 = vmov 0.0   ;;  %vm766_vm6 = vmmov 0   ;;  %v767_v37 = vmov 3   ;;  %v451_v54 = vld [vmem:[#allocation5] sm:$0xff]  ;;  %v457_v56 = vld [vmem:[#allocation6] sm:$0xff] }
 0x17c   : > { %360 = vperm.xlu1 %689, %v838_v4   ;;  %631 = vmatprep.subr.mxu0 %v765_v36  ;;  %vm374_vm7 = vcmask 64512   ;;  %vm455_vm8 = vcmask 7168  }
 0x17d   : > { %633 = vmatprep.mubr.msk.f32.mxu0 %vm766_vm6, %v765_v36 }
 0x180   : > { %690 = vset.pattern.permute.xlu1 %v764_v26 }
 0x181   : > { %365 = vperm.xlu1 %690, %v838_v4  }
 0x188   : > { %v693_v29 = vpop.eup %692 }
 0x189   : > { %v339_v30 = vmul.f32 %v693_v29, %v336_v27  ;;  %v341_v31 = vmul.f32 %v693_v29, %v340_v28 }
 0x18b   : > { %346 = vperm.xlu0 %688, %v339_v30   ;;  %v342_v32 = vmul.f32 %v339_v30, %v339_v30 }
 0x18d   : > { %v343_v33 = vsub.f32 %v341_v31, %v342_v32 }
 0x18f   : > { %v350_v34 = vadd.f32 1e-05, %v343_v33 }
 0x191   : > { %694 = vrsqrt.f32 %v350_v34 }
 0x19e   : > { %v695_v35 = vpop.eup %694 }
 0x19f   : > { %354 = vperm.xlu0 %688, %v695_v35  }
 0x1a3   : > { %691 = vset.pattern.permute.xlu0 %v767_v37 }
 0x1a4   : > { %371 = vperm.xlu0 %691, %v838_v4  }
 0x1f7   : > { %v361_v40 = vpop.permute.xlu1 %360 }
 0x1fc   : > { %v366_v44 = vpop.permute.xlu1 %365 }
 0x206   : > { %v347_v38 = vpop.permute.xlu0 %346 }
 0x207   : > { %v349_v41 = vsub.f32 %v335_v39, %v347_v38 }
 0x21a   : > { %v355_v42 = vpop.permute.xlu0 %354 }
 0x21b   : > { %v357_v43 = vmul.f32 %v355_v42, %v349_v41 }
 0x21d   : > { %v363_v45 = vmul.f32 %v361_v40, %v357_v43 }
 0x21f   : > { %v368_v46 = vadd.f32 %v366_v44, %v363_v45  ;;  %v372_v48 = vpop.permute.xlu0 %371 }
 0x221   : > { %v369_v47 = vmax.f32 %v368_v46, 0.0 }
 0x223   : > { %632 = vmatpush3.msra.mxu0 %v369_v47 }
 0x224   : > { %634 = vmatmul.mubr.msk.f32.vlgmr.msra.gmra.mxu0 %vm374_vm7, %v833_v3 }
 0x2e4   : > { %v444_v49 = vpop.f32.mrf.mxu0 }
 0x2e5   : > { %v445_v50 = vadd.f32 %v444_v49, %v372_v48 }
 0x2e6   : > { %v635_v51 = vpop.f32.mrf.mxu0 }
 0x2e7   : > { %463 = vst [vmem:[#allocation2] sm:$0xff] %v445_v50  ;;  %v450_v52 = vsel %vm842_vm1, %v445_v50, 0.0 }
 0x2e8   : > { %452 = vadd.xlane.f32.xlu1 %v450_v52  ;;  %v458_v53 = vmul.f32 %v450_v52, %v450_v52 }
 0x2ea   : > { %459 = vadd.xlane.f32.xlu0 %v458_v53 }
 0x371   : > { %v453_v55 = vpop.xlane.xlu1 %452 }
 0x372   : > { %v454_v57 = vadd.f32 %v453_v55, %v451_v54 }
 0x373   : > { %v460_v58 = vpop.xlane.xlu0 %459 }
 0x374   : > { %456 = vst.msk [vmem:[#allocation5] sm:$0xff] %vm455_vm8, %v454_v57  ;;  %v461_v59 = vadd.f32 %v460_v58, %v457_v56 }
 0x376   : > { %462 = vst.msk [vmem:[#allocation6] sm:$0xff] %vm455_vm8, %v461_v59 }
 0x377 PF: > { %p616_p7 = scmp.ne.s32.totalorder %s748_s17, 2 }
 0x379   : > { %467 = sbr.rel (%p616_p7) target bundleno = 1080 (0x438), region = 48 }
 0x37e   : > { %v473_v60 = vstv %s211_s29  ;;  %v768_v61 = vmov 0   ;;  %v769_v62 = vmov 4   ;;  %v770_v63 = vmov 5   ;;  %v472_v1 = vld [vmem:[#allocation5] sm:$0xff]  ;;  %v476_v2 = vld [vmem:[#allocation6] sm:$0xff] }
 0x37f   : > { %698 = vset.pattern.permute.xlu0 %v768_v61  ;;  %702 = vrcp.f32 %v473_v60  ;;  %696 = vset.pattern.permute.xlu1 %v769_v62  ;;  %v771_v0 = vmov 7   ;;  %v772_v11 = vmov 6   ;;  %v471_v13 = vld [vmem:[#allocation2] sm:$0xff] }
 0x380   : > { %496 = vperm.xlu1 %696, %v838_v4  }
 0x384   : > { %697 = vset.pattern.permute.xlu1 %v770_v63 }
 0x385   : > { %501 = vperm.xlu1 %697, %v838_v4  }
 0x389   : > { %700 = vset.pattern.permute.xlu1 %v771_v0 }
 0x38a   : > { %518 = vperm.xlu1 %700, %v838_v4  }
 0x38c   : > { %v703_v3 = vpop.eup %702 }
 0x38d   : > { %v475_v5 = vmul.f32 %v703_v3, %v472_v1  ;;  %v477_v6 = vmul.f32 %v703_v3, %v476_v2 }
 0x38f   : > { %482 = vperm.xlu0 %698, %v475_v5   ;;  %v478_v7 = vmul.f32 %v475_v5, %v475_v5 }
 0x391   : > { %v479_v8 = vsub.f32 %v477_v6, %v478_v7 }
 0x393   : > { %v486_v9 = vadd.f32 1e-05, %v479_v8 }
 0x395   : > { %704 = vrsqrt.f32 %v486_v9 }
 0x3a2   : > { %v705_v10 = vpop.eup %704 }
 0x3a3   : > { %490 = vperm.xlu0 %698, %v705_v10  }
 0x3a7   : > { %699 = vset.pattern.permute.xlu0 %v772_v11 }
 0x3a8   : > { %507 = vperm.xlu0 %699, %v838_v4  }
 0x3ac   : > { %701 = vset.pattern.permute.xlu0 %v771_v0 }
 0x3fb   : > { %v497_v14 = vpop.permute.xlu1 %496 }
 0x400   : > { %v502_v18 = vpop.permute.xlu1 %501 }
 0x405   : > { %v519_v29 = vpop.permute.xlu1 %518 }
 0x40a   : > { %v483_v12 = vpop.permute.xlu0 %482 }
 0x40b   : > { %v485_v15 = vsub.f32 %v471_v13, %v483_v12 }
 0x41e   : > { %v491_v16 = vpop.permute.xlu0 %490 }
 0x41f   : > { %v493_v17 = vmul.f32 %v491_v16, %v485_v15 }
 0x421   : > { %v499_v19 = vmul.f32 %v497_v14, %v493_v17 }
 0x423   : > { %v504_v20 = vadd.f32 %v502_v18, %v499_v19  ;;  %v508_v21 = vpop.permute.xlu0 %507 }
 0x425   : > { %v505_v22 = vmax.f32 %v504_v20, 0.0 }
 0x427   : > { %v510_v23 = vmul.f32 %v508_v21, %v505_v22 }
 0x429   : > { %v511_v24 = vrot.slane %v510_v23, 4 }
 0x42b   : > { %v512_v25 = vadd.f32 %v511_v24, %v510_v23 }
 0x42d   : > { %v513_v26 = vrot.slane %v512_v25, 2 }
 0x42f   : > { %v514_v27 = vadd.f32 %v513_v26, %v512_v25 }
 0x431   : > { %v515_v28 = vrot.slane %v514_v27, 1 }
 0x433   : > { %v516_v4 = vadd.f32 %v515_v28, %v514_v27 }
 0x435   : > { %v521_v30 = vadd.f32 %v519_v29, %v516_v4 }
 0x437   : > { %522 = vst [vmem:[#allocation9] sm:$0x1] %v521_v30 }
 0x438 PF: > { %p871_p8 = scmp.eq.s32.totalorder %s604_s0, 2  ;;  %s773_s7 = smov [#allocation9]  }
 0x439   : > { %s538_s8 = sshll.u32 %s773_s7, 4  ;;  %s539_s8 = int_to_ptr.vmem [resolvable:$true] %s538_s8 }
 0x43a   : > { %s706_s9 = scalar_lea.vmem %s539_s8, 16  ;;  %s712_s10 = scalar_lea.vmem %s539_s8, 32 }
 0x43b   : > { %p707_p9 = scmp.ne.s32.totalorder %s539_s8, %s706_s9  ;;  %p713_p12 = scmp.lt.s32.totalorder %s539_s8, %s539_s8 }
 0x43c   : > { %p714_p13 = scmp.lt.s32.totalorder %s712_s10, %s706_s9 }
 0x43d   : > { %p708_p10 = pnand %p707_p9, %p871_p8 }
 0x43e   : > { %p715_p0 = por %p714_p13, %p713_p12 }
 0x43f   : > { %p709_p11 = pneg %p708_p10 }
 0x441   : > { %p716_p1 = pnand %p715_p0, %p709_p11 }
 0x443   : > { %719 = shalt.err (!%p716_p1)
}
 0x444   : > { %637 = dma.vmem_to_hbm [thread:$0]  (%p871_p8), %s539_s8, 16, %s898_s4, [#allocation10]  }
 0x445 PF: > { %p645_p2 = scmp.ge.s32.totalorder %s756_s19, 2  ;;  %p646_p3 = scmp.eq.s32.totalorder %s605_s20, 2 }
 0x447   : > { %p641_p4 = pnand %p646_p3, %p645_p2 }
 0x449   : > { %p642_p5 = pneg %p641_p4 }
 0x44b   : > { %743 = dma.done.wait (%p642_p5), [#allocation10], 16  }
 0x44c   : > { %745 = vsyncadd (%p642_p5), [#allocation10], 4294967280  ;;  %s18_s19 = sadd.s32 1, %s756_s19   ;;  %s902_s17 = smov %s752_s18 }
 0x44d   : > { %p15_p6 = scmp.ge.s32.totalorder %s18_s19, 5   ;;  %s903_s18 = smov %s905_s21 }
 0x44f   :  { %17 = sbr.rel (!%p15_p6) target bundleno = 5 (0x5), region = 86 }
 0x454   :  { %555 = vsyncpa [#allocation10], 1 }
 0x455   :  { %557 = vsyncpa [#allocation10 + $0x1], 1 }

</bundles_post_ra>
